<compile_context>
chip_gen: v5e
topology: v5e:2x2
jax: 0.10.0
libtpu: 0.0.40
codegen_flags: <defaults>
</compile_context>

<pallas_src>
import functools

import jax
import jax.numpy as jnp
import numpy as np
from jax.experimental import pallas as pl
from jax.experimental.pallas import tpu as pltpu


def _mha_flash_kernel(kp_ref, vp_ref, q_ref, mask_ref, wq_ref, wo_ref, bo_ref,
                      o_ref,
                      qp_ref, m_ref, l_ref, acc_ref,
                      *, heads, d_k, neg_big, approx_recip, exp_dtype):
    """Grid = (batch, q_tiles, k_tiles); the k axis is the 'arbitrary' reduction axis."""
    ki = pl.program_id(2)
    last_k = pl.num_programs(2) - 1
    cd = kp_ref.dtype                      # matmul-input dtype (f32 or bf16)

    # ---- once per (batch, q_tile): Q projection (full-width GEMM) + flash init ----
    @pl.when(ki == 0)
    def _init():
        qp_ref[...] = jnp.dot(q_ref[0], wq_ref[...],
                              preferred_element_type=jnp.float32).astype(cd)
        m_ref[...] = jnp.full(m_ref.shape, -jnp.inf, jnp.float32)
        l_ref[...] = jnp.zeros(l_ref.shape, jnp.float32)
        acc_ref[...] = jnp.zeros(acc_ref.shape, jnp.float32)

    # Additive mask bias, hoisted out of the head loop (scale already folded into Wq):
    #   kept   -> +0
    #   masked -> -1e10 / sqrt(d_k)   (== masked_fill(-1e10) followed by / sqrt(d_k))
    bias = ((mask_ref[0, 0] != 0).astype(jnp.float32) - 1.0) * neg_big    # (tq, tk)

    kp = kp_ref[0]        # (tk, d_model)  projected keys
    vp = vp_ref[0]        # (tk, d_model)  projected values
    qp = qp_ref[...]      # (tq, d_model)  projected + pre-scaled queries

    # Static loop: heads is small (see TODO at top for large head counts).
    for h in range(heads):
        lo, hi = h * d_k, (h + 1) * d_k
        s = jnp.einsum('qd,kd->qk', qp[:, lo:hi], kp[:, lo:hi],
                       preferred_element_type=jnp.float32)               # (tq, tk)
        s = s + bias

        m_prev = m_ref[:, h:h + 1]                                        # (tq, 1)
        m_new = jnp.maximum(m_prev, jnp.max(s, axis=-1, keepdims=True))
        alpha = jnp.exp(m_prev - m_new)                                    # f32 (tq, 1)
        p = jnp.exp((s - m_new).astype(exp_dtype))                         # bf16 on fast path
        l_ref[:, h:h + 1] = alpha * l_ref[:, h:h + 1] + \
            jnp.sum(p.astype(jnp.float32), axis=-1, keepdims=True)
        acc_ref[:, lo:hi] = alpha * acc_ref[:, lo:hi] + \
            jnp.dot(p.astype(cd), vp[:, lo:hi], preferred_element_type=jnp.float32)
        m_ref[:, h:h + 1] = m_new

    # ---- once per (batch, q_tile): normalize, pack heads, ONE output-projection GEMM ----
    @pl.when(ki == last_k)
    def _finalize():
        outs = []
        for h in range(heads):
            lo, hi = h * d_k, (h + 1) * d_k
            inv_l = pl.reciprocal(l_ref[:, h:h + 1], approx=approx_recip)
            outs.append((acc_ref[:, lo:hi] * inv_l).astype(cd))
        packed = jnp.concatenate(outs, axis=-1)                            # (tq, d_model)
        out = jnp.dot(packed, wo_ref[...],
                      preferred_element_type=jnp.float32) + bo_ref[...]
        o_ref[0] = out.astype(o_ref.dtype)


def _choose_q_tile(q_len, cap=256):
    if q_len <= cap:
        return q_len
    for t in (256, 128, 64, 32, 16, 8):
        if q_len % t == 0:
            return t
    return q_len


def _choose_k_tile(k_len, cap=512):
    # The mask block puts k on the lane axis -> k tiles must be multiples of 128 or full.
    if k_len <= cap:
        return k_len
    for t in (512, 384, 256, 128):
        if k_len % t == 0:
            return t
    return k_len


def multihead_attention(value, key, query, mask, params, *, heads,
                        q_tile=None, k_tile=None, use_bf16=False):
    """value/key/query: (N, L, d_model); mask: (N, 1, q_len, k_len), nonzero = keep."""
    wv, wk, wq, wo, bo = params
    value = value.astype(jnp.float32)
    key = key.astype(jnp.float32)
    query = query.astype(jnp.float32)

    n, q_len, d_model = query.shape
    k_len = key.shape[1]
    v_len = value.shape[1]
    assert v_len == k_len, "value/key sequence lengths must match"
    d_k = d_model // heads
    assert d_k * heads == d_model, "Invalid d_model"

    cd = jnp.bfloat16 if use_bf16 else jnp.float32
    inv_scale = 1.0 / float(np.sqrt(d_k))

    # ---- Host-side, once per call (full-width XLA GEMMs) ----
    # K / V projections depend only on the batch -> hoisted out of the kernel entirely.
    kproj = jnp.matmul(key, wk.T).astype(cd)       # (N, k_len, d_model)
    vproj = jnp.matmul(value, wv.T).astype(cd)     # (N, k_len, d_model)
    # Q projection stays in-kernel (one GEMM per q-tile); fold 1/sqrt(d_k) into Wq.
    wqT = (wq.T * inv_scale).astype(cd)            # (d_model, d_model)
    woT = wo.T.astype(cd)                          # (d_model, d_model)
    bo2d = bo.reshape(1, d_model).astype(jnp.float32)
    query = query.astype(cd)

    if mask is None:
        mask = jnp.ones((n, 1, q_len, k_len), jnp.float32)

    tq = q_tile or _choose_q_tile(q_len)
    tk = k_tile or _choose_k_tile(k_len)
    assert q_len % tq == 0 and (tq == q_len or tq % 8 == 0), "bad q tile"
    assert k_len % tk == 0 and (tk == k_len or tk % 128 == 0), "bad k tile"
    n_qt, n_kt = q_len // tq, k_len // tk

    kernel = functools.partial(
        _mha_flash_kernel, heads=heads, d_k=d_k,
        neg_big=float(1e10 * inv_scale),
        approx_recip=bool(use_bf16),
        exp_dtype=cd if use_bf16 else jnp.float32)

    # Size VMEM to the actual working set (double-buffered blocks + scratch).
    isz = jnp.dtype(cd).itemsize
    mask_isz = jnp.dtype(mask.dtype).itemsize
    block_bytes = 2 * (2 * tk * d_model * isz          # K + V projection tiles
                       + tq * d_model * isz            # query tile
                       + tq * tk * mask_isz            # mask tile
                       + 2 * d_model * d_model * isz   # Wq^T + Wo^T
                       + d_model * 4                   # bias
                       + tq * d_model * 4)             # output tile
    scratch_bytes = (tq * d_model * (isz + 4)          # Q scratch + f32 accumulator
                     + 2 * tq * max(heads, 128) * 4)   # running max / sum (lane-padded)
    vmem_limit = int(min(max(block_bytes + scratch_bytes + (2 << 20), 16 << 20),
                         64 << 20))

    const2 = lambda b, qi, ki: (0, 0)
    return pl.pallas_call(
        kernel,
        out_shape=jax.ShapeDtypeStruct((n, q_len, d_model), jnp.float32),
        grid=(n, n_qt, n_kt),
        in_specs=[
            pl.BlockSpec((1, tk, d_model), lambda b, qi, ki: (b, ki, 0)),    # K proj
            pl.BlockSpec((1, tk, d_model), lambda b, qi, ki: (b, ki, 0)),    # V proj
            pl.BlockSpec((1, tq, d_model), lambda b, qi, ki: (b, qi, 0)),    # query
            pl.BlockSpec((1, 1, tq, tk), lambda b, qi, ki: (b, 0, qi, ki)),  # mask
            pl.BlockSpec((d_model, d_model), const2),                        # Wq^T (scaled)
            pl.BlockSpec((d_model, d_model), const2),                        # Wo^T
            pl.BlockSpec((1, d_model), const2),                              # bo
        ],
        out_specs=pl.BlockSpec((1, tq, d_model), lambda b, qi, ki: (b, qi, 0)),
        scratch_shapes=[
            pltpu.VMEM((tq, d_model), cd),            # projected + scaled Q
            pltpu.VMEM((tq, heads), jnp.float32),     # running max (one column per head)
            pltpu.VMEM((tq, heads), jnp.float32),     # running sum
            pltpu.VMEM((tq, d_model), jnp.float32),   # un-normalized attn @ V, head-packed
        ],
        compiler_params=pltpu.CompilerParams(
            dimension_semantics=("parallel", "parallel", "arbitrary"),
            vmem_limit_bytes=vmem_limit),
    )(kproj, vproj, query, mask, wqT, woT, bo2d)


def _reference(value, key, query, mask, params, *, heads):
    """Plain-JAX re-implementation of the PyTorch forward for verification."""
    wv, wk, wq, wo, bo = params
    n, q_len, d_model = query.shape
    d_k = d_model // heads
    V = value @ wv.T
    K = key @ wk.T
    Q = query @ wq.T
    Q = Q.reshape(n, q_len, heads, d_k)
    K = K.reshape(n, key.shape[1], heads, d_k)
    V = V.reshape(n, value.shape[1], heads, d_k)
    s = jnp.einsum('nqhd,nkhd->nhqk', Q, K)
    s = jnp.where(mask == 0, -1e10, s)
    attn = jax.nn.softmax(s / (d_k ** 0.5), axis=-1)
    out = jnp.einsum('nhql,nlhd->nqhd', attn, V).reshape(n, q_len, heads * d_k)
    return out @ wo.T + bo


if __name__ == "__main__":
    d_model, heads = 32, 4
    key0 = jax.random.PRNGKey(0)
    ks = jax.random.split(key0, 12)

    # Deterministic parameter init (nn.Linear-style uniform bound).
    bound = 1.0 / np.sqrt(d_model)
    wq = jax.random.uniform(ks[0], (d_model, d_model), jnp.float32, -bound, bound)
    wk = jax.random.uniform(ks[1], (d_model, d_model), jnp.float32, -bound, bound)
    wv = jax.random.uniform(ks[2], (d_model, d_model), jnp.float32, -bound, bound)
    wo = jax.random.uniform(ks[3], (d_model, d_model), jnp.float32, -bound, bound)
    bo = jax.random.uniform(ks[4], (d_model,), jnp.float32, -bound, bound)
    params = (wv, wk, wq, wo, bo)

    # ---- Case 1: small shapes (N=2, seq=8), single q/k tile ----
    n, seq = 2, 8
    value = jax.random.normal(ks[5], (n, seq, d_model), jnp.float32)
    key_in = jax.random.normal(ks[6], (n, seq, d_model), jnp.float32)
    query = jax.random.normal(ks[7], (n, seq, d_model), jnp.float32)
    mask = (jax.random.uniform(ks[8], (n, 1, seq, seq)) > 0.2).astype(jnp.float32)
    mask = jnp.maximum(mask, jnp.eye(seq, dtype=jnp.float32)[None, None])  # no fully-masked rows

    ref = _reference(value, key_in, query, mask, params, heads=heads)

    out_f32 = jax.block_until_ready(
        multihead_attention(value, key_in, query, mask, params, heads=heads))
    np.testing.assert_allclose(np.asarray(out_f32), np.asarray(ref),
                               rtol=1e-4, atol=1e-4)

    out_bf16 = jax.block_until_ready(
        multihead_attention(value, key_in, query, mask, params, heads=heads,
                            use_bf16=True))
    np.testing.assert_allclose(np.asarray(out_bf16), np.asarray(ref),
                               rtol=5e-2, atol=5e-2)

    # ---- Case 2: longer sequence exercising q/k tiling + online softmax (2 x 2 k tiles) ----
    n2, seq2 = 2, 256
    ks2 = jax.random.split(jax.random.PRNGKey(1), 4)
    value2 = jax.random.normal(ks2[0], (n2, seq2, d_model), jnp.float32)
    key2 = jax.random.normal(ks2[1], (n2, seq2, d_model), jnp.float32)
    query2 = jax.random.normal(ks2[2], (n2, seq2, d_model), jnp.float32)
    mask2 = (jax.random.uniform(ks2[3], (n2, 1, seq2, seq2)) > 0.2).astype(jnp.float32)
    mask2 = jnp.maximum(mask2, jnp.eye(seq2, dtype=jnp.float32)[None, None])

    ref2 = _reference(value2, key2, query2, mask2, params, heads=heads)
    out2 = jax.block_until_ready(
        multihead_attention(value2, key2, query2, mask2, params, heads=heads,
                            q_tile=128, k_tile=128))
    np.testing.assert_allclose(np.asarray(out2), np.asarray(ref2),
                               rtol=2e-2, atol=2e-2)

    print("KERNEL_OK")
</pallas_src>

<mosaic_0001>
module attributes {stable_mosaic.version = 11 : i64} {
  func.func @_mha_flash_kernel(%arg0: i32, %arg1: i32, %arg2: i32, %arg3: memref<1x8x32xf32, #tpu.memory_space<vmem>>, %arg4: memref<1x8x32xf32, #tpu.memory_space<vmem>>, %arg5: memref<1x8x32xf32, #tpu.memory_space<vmem>>, %arg6: memref<1x1x8x8xf32, #tpu.memory_space<vmem>>, %arg7: memref<32x32xf32, #tpu.memory_space<vmem>>, %arg8: memref<32x32xf32, #tpu.memory_space<vmem>>, %arg9: memref<1x32xf32, #tpu.memory_space<vmem>>, %arg10: memref<1x8x32xf32, #tpu.memory_space<vmem>>, %arg11: memref<8x32xf32, #tpu.memory_space<vmem>>, %arg12: memref<8x4xf32, #tpu.memory_space<vmem>>, %arg13: memref<8x4xf32, #tpu.memory_space<vmem>>, %arg14: memref<8x32xf32, #tpu.memory_space<vmem>>) attributes {dimension_semantics = [#tpu.dimension_semantics<parallel>, #tpu.dimension_semantics<parallel>, #tpu.dimension_semantics<arbitrary>], iteration_bounds = array<i64: 2, 1, 1>, scalar_prefetch = 0 : i64, scratch_operands = 4 : i64, tpu.core_type = #tpu.core_type<tc>, window_params = [{transform_indices = @transform_0, window_bounds = array<i64: 1, 8, 32>}, {transform_indices = @transform_1, window_bounds = array<i64: 1, 8, 32>}, {transform_indices = @transform_2, window_bounds = array<i64: 1, 8, 32>}, {transform_indices = @transform_3, window_bounds = array<i64: 1, 1, 8, 8>}, {pipeline_mode = #tpu.pipeline_mode<synchronous>, transform_indices = @transform_4, window_bounds = array<i64: 32, 32>}, {pipeline_mode = #tpu.pipeline_mode<synchronous>, transform_indices = @transform_5, window_bounds = array<i64: 32, 32>}, {pipeline_mode = #tpu.pipeline_mode<synchronous>, transform_indices = @transform_6, window_bounds = array<i64: 1, 32>}, {transform_indices = @transform_7, window_bounds = array<i64: 1, 8, 32>}]} {
    %c0_i32 = arith.constant 0 : i32
    %0 = arith.cmpi eq, %arg2, %c0_i32 : i32
    %1 = arith.extui %0 : i1 to i32
    %c0_i32_0 = arith.constant 0 : i32
    %2 = arith.cmpi ne, %1, %c0_i32_0 : i32
    scf.if %2 {
      %c0_74 = arith.constant 0 : index
      %c0_75 = arith.constant 0 : index
      %c0_76 = arith.constant 0 : index
      %129 = vector.load %arg5[%c0_74, %c0_75, %c0_76] : memref<1x8x32xf32, #tpu.memory_space<vmem>>, vector<1x8x32xf32>
      %130 = vector.shape_cast %129 : vector<1x8x32xf32> to vector<8x32xf32>
      %c0_77 = arith.constant 0 : index
      %c0_78 = arith.constant 0 : index
      %131 = vector.load %arg7[%c0_77, %c0_78] : memref<32x32xf32, #tpu.memory_space<vmem>>, vector<32x32xf32>
      %cst_79 = arith.constant dense<0.000000e+00> : vector<8x32xf32>
      %132 = tpu.matmul %130, %131, %cst_79 {dimension_numbers = #tpu.dot_dimension_numbers<[1], [0], [0], [1], [0, 0, 1, 1], [], []>} : vector<8x32xf32>, vector<32x32xf32>, vector<8x32xf32> -> vector<8x32xf32>
      %c0_80 = arith.constant 0 : index
      %c0_81 = arith.constant 0 : index
      %133 = vector.load %arg11[%c0_80, %c0_81] : memref<8x32xf32, #tpu.memory_space<vmem>>, vector<8x32xf32>
      tpu.vector_store %arg11[%c0_80, %c0_81], %132 {strides = array<i32>} : memref<8x32xf32, #tpu.memory_space<vmem>>, vector<8x32xf32>,
      %cst_82 = arith.constant 0xFF800000 : f32
      %134 = vector.broadcast %cst_82 : f32 to vector<8x4xf32>
      %c0_83 = arith.constant 0 : index
      %c0_84 = arith.constant 0 : index
      %135 = vector.load %arg12[%c0_83, %c0_84] : memref<8x4xf32, #tpu.memory_space<vmem>>, vector<8x4xf32>
      tpu.vector_store %arg12[%c0_83, %c0_84], %134 {strides = array<i32>} : memref<8x4xf32, #tpu.memory_space<vmem>>, vector<8x4xf32>,
      %cst_85 = arith.constant 0.000000e+00 : f32
      %136 = vector.broadcast %cst_85 : f32 to vector<8x4xf32>
      %c0_86 = arith.constant 0 : index
      %c0_87 = arith.constant 0 : index
      %137 = vector.load %arg13[%c0_86, %c0_87] : memref<8x4xf32, #tpu.memory_space<vmem>>, vector<8x4xf32>
      tpu.vector_store %arg13[%c0_86, %c0_87], %136 {strides = array<i32>} : memref<8x4xf32, #tpu.memory_space<vmem>>, vector<8x4xf32>,
      %cst_88 = arith.constant 0.000000e+00 : f32
      %138 = vector.broadcast %cst_88 : f32 to vector<8x32xf32>
      %c0_89 = arith.constant 0 : index
      %c0_90 = arith.constant 0 : index
      %139 = vector.load %arg14[%c0_89, %c0_90] : memref<8x32xf32, #tpu.memory_space<vmem>>, vector<8x32xf32>
      tpu.vector_store %arg14[%c0_89, %c0_90], %138 {strides = array<i32>} : memref<8x32xf32, #tpu.memory_space<vmem>>, vector<8x32xf32>,
    } else {
    }
    %c0 = arith.constant 0 : index
    %c0_1 = arith.constant 0 : index
    %c0_2 = arith.constant 0 : index
    %c0_3 = arith.constant 0 : index
    %3 = vector.load %arg6[%c0, %c0_1, %c0_2, %c0_3] : memref<1x1x8x8xf32, #tpu.memory_space<vmem>>, vector<1x1x8x8xf32>
    %4 = vector.shape_cast %3 : vector<1x1x8x8xf32> to vector<8x8xf32>
    %cst = arith.constant 0.000000e+00 : f32
    %5 = vector.broadcast %cst : f32 to vector<8x8xf32>
    %6 = arith.cmpf one, %4, %5 : vector<8x8xf32>
    %7 = arith.extui %6 : vector<8x8xi1> to vector<8x8xi32>
    %8 = arith.sitofp %7 : vector<8x8xi32> to vector<8x8xf32>
    %cst_4 = arith.constant 1.000000e+00 : f32
    %9 = vector.broadcast %cst_4 : f32 to vector<8x8xf32>
    %10 = arith.subf %8, %9 : vector<8x8xf32>
    %cst_5 = arith.constant 3.53553382E+9 : f32
    %11 = vector.broadcast %cst_5 : f32 to vector<8x8xf32>
    %12 = arith.mulf %10, %11 : vector<8x8xf32>
    %c0_6 = arith.constant 0 : index
    %c0_7 = arith.constant 0 : index
    %c0_8 = arith.constant 0 : index
    %13 = vector.load %arg3[%c0_6, %c0_7, %c0_8] : memref<1x8x32xf32, #tpu.memory_space<vmem>>, vector<1x8x32xf32>
    %14 = vector.shape_cast %13 : vector<1x8x32xf32> to vector<8x32xf32>
    %c0_9 = arith.constant 0 : index
    %c0_10 = arith.constant 0 : index
    %c0_11 = arith.constant 0 : index
    %15 = vector.load %arg4[%c0_9, %c0_10, %c0_11] : memref<1x8x32xf32, #tpu.memory_space<vmem>>, vector<1x8x32xf32>
    %16 = vector.shape_cast %15 : vector<1x8x32xf32> to vector<8x32xf32>
    %c0_12 = arith.constant 0 : index
    %c0_13 = arith.constant 0 : index
    %17 = vector.load %arg11[%c0_12, %c0_13] : memref<8x32xf32, #tpu.memory_space<vmem>>, vector<8x32xf32>
    %18 = vector.extract_strided_slice %17 {offsets = [0, 0], sizes = [8, 8], strides = [1, 1]} : vector<8x32xf32> to vector<8x8xf32>
    %19 = vector.extract_strided_slice %14 {offsets = [0, 0], sizes = [8, 8], strides = [1, 1]} : vector<8x32xf32> to vector<8x8xf32>
    "tpu.trace_start"() <{level = 10 : i32, message = "qd,kd->qk"}> : () -> ()
    %cst_14 = arith.constant dense<0.000000e+00> : vector<8x8xf32>
    %20 = tpu.matmul %18, %19, %cst_14 {dimension_numbers = #tpu.dot_dimension_numbers<[1], [1], [0], [0], [0, 0, 1, 0], [], []>} : vector<8x8xf32>, vector<8x8xf32>, vector<8x8xf32> -> vector<8x8xf32>
    "tpu.trace_stop"() : () -> ()
    %21 = arith.addf %20, %12 : vector<8x8xf32>
    %c0_15 = arith.constant 0 : index
    %c0_16 = arith.constant 0 : index
    %22 = vector.load %arg12[%c0_15, %c0_16] : memref<8x4xf32, #tpu.memory_space<vmem>>, vector<8x1xf32>
    %cst_17 = arith.constant dense<0xFF800000> : vector<8xf32>
    %23 = vector.multi_reduction <maximumf>, %21, %cst_17 [1] : vector<8x8xf32> to vector<8xf32>
    %24 = vector.shape_cast %23 : vector<8xf32> to vector<8x1xf32>
    %25 = arith.maximumf %22, %24 : vector<8x1xf32>
    %26 = arith.subf %22, %25 : vector<8x1xf32>
    %27 = math.exp %26 : vector<8x1xf32>
    %28 = vector.broadcast %25 : vector<8x1xf32> to vector<8x8xf32>
    %29 = arith.subf %21, %28 : vector<8x8xf32>
    %30 = math.exp %29 : vector<8x8xf32>
    %c0_18 = arith.constant 0 : index
    %c0_19 = arith.constant 0 : index
    %31 = vector.load %arg13[%c0_18, %c0_19] : memref<8x4xf32, #tpu.memory_space<vmem>>, vector<8x1xf32>
    %32 = arith.mulf %27, %31 : vector<8x1xf32>
    %cst_20 = arith.constant dense<0.000000e+00> : vector<8xf32>
    %33 = vector.multi_reduction <add>, %30, %cst_20 [1] : vector<8x8xf32> to vector<8xf32>
    %34 = vector.shape_cast %33 : vector<8xf32> to vector<8x1xf32>
    %35 = arith.addf %32, %34 : vector<8x1xf32>
    %c0_21 = arith.constant 0 : index
    %c0_22 = arith.constant 0 : index
    %36 = vector.load %arg13[%c0_21, %c0_22] : memref<8x4xf32, #tpu.memory_space<vmem>>, vector<8x1xf32>
    tpu.vector_store %arg13[%c0_21, %c0_22], %35 {strides = array<i32>} : memref<8x4xf32, #tpu.memory_space<vmem>>, vector<8x1xf32>,
    %c0_23 = arith.constant 0 : index
    %c0_24 = arith.constant 0 : index
    %37 = vector.load %arg14[%c0_23, %c0_24] : memref<8x32xf32, #tpu.memory_space<vmem>>, vector<8x8xf32>
    %38 = vector.broadcast %27 : vector<8x1xf32> to vector<8x8xf32>
    %39 = arith.mulf %38, %37 : vector<8x8xf32>
    %40 = vector.extract_strided_slice %16 {offsets = [0, 0], sizes = [8, 8], strides = [1, 1]} : vector<8x32xf32> to vector<8x8xf32>
    %cst_25 = arith.constant dense<0.000000e+00> : vector<8x8xf32>
    %41 = tpu.matmul %30, %40, %cst_25 {dimension_numbers = #tpu.dot_dimension_numbers<[1], [0], [0], [1], [0, 0, 1, 1], [], []>} : vector<8x8xf32>, vector<8x8xf32>, vector<8x8xf32> -> vector<8x8xf32>
    %42 = arith.addf %39, %41 : vector<8x8xf32>
    %c0_26 = arith.constant 0 : index
    %c0_27 = arith.constant 0 : index
    %43 = vector.load %arg14[%c0_26, %c0_27] : memref<8x32xf32, #tpu.memory_space<vmem>>, vector<8x8xf32>
    tpu.vector_store %arg14[%c0_26, %c0_27], %42 {strides = array<i32>} : memref<8x32xf32, #tpu.memory_space<vmem>>, vector<8x8xf32>,
    %c0_28 = arith.constant 0 : index
    %c0_29 = arith.constant 0 : index
    %44 = vector.load %arg12[%c0_28, %c0_29] : memref<8x4xf32, #tpu.memory_space<vmem>>, vector<8x1xf32>
    tpu.vector_store %arg12[%c0_28, %c0_29], %25 {strides = array<i32>} : memref<8x4xf32, #tpu.memory_space<vmem>>, vector<8x1xf32>,
    %45 = vector.extract_strided_slice %17 {offsets = [0, 8], sizes = [8, 8], strides = [1, 1]} : vector<8x32xf32> to vector<8x8xf32>
    %46 = vector.extract_strided_slice %14 {offsets = [0, 8], sizes = [8, 8], strides = [1, 1]} : vector<8x32xf32> to vector<8x8xf32>
    "tpu.trace_start"() <{level = 10 : i32, message = "qd,kd->qk"}> : () -> ()
    %cst_30 = arith.constant dense<0.000000e+00> : vector<8x8xf32>
    %47 = tpu.matmul %45, %46, %cst_30 {dimension_numbers = #tpu.dot_dimension_numbers<[1], [1], [0], [0], [0, 0, 1, 0], [], []>} : vector<8x8xf32>, vector<8x8xf32>, vector<8x8xf32> -> vector<8x8xf32>
    "tpu.trace_stop"() : () -> ()
    %48 = arith.addf %47, %12 : vector<8x8xf32>
    %c0_31 = arith.constant 0 : index
    %c1 = arith.constant 1 : index
    %49 = vector.load %arg12[%c0_31, %c1] : memref<8x4xf32, #tpu.memory_space<vmem>>, vector<8x1xf32>
    %cst_32 = arith.constant dense<0xFF800000> : vector<8xf32>
    %50 = vector.multi_reduction <maximumf>, %48, %cst_32 [1] : vector<8x8xf32> to vector<8xf32>
    %51 = vector.shape_cast %50 : vector<8xf32> to vector<8x1xf32>
    %52 = arith.maximumf %49, %51 : vector<8x1xf32>
    %53 = arith.subf %49, %52 : vector<8x1xf32>
    %54 = math.exp %53 : vector<8x1xf32>
    %55 = vector.broadcast %52 : vector<8x1xf32> to vector<8x8xf32>
    %56 = arith.subf %48, %55 : vector<8x8xf32>
    %57 = math.exp %56 : vector<8x8xf32>
    %c0_33 = arith.constant 0 : index
    %c1_34 = arith.constant 1 : index
    %58 = vector.load %arg13[%c0_33, %c1_34] : memref<8x4xf32, #tpu.memory_space<vmem>>, vector<8x1xf32>
    %59 = arith.mulf %54, %58 : vector<8x1xf32>
    %cst_35 = arith.constant dense<0.000000e+00> : vector<8xf32>
    %60 = vector.multi_reduction <add>, %57, %cst_35 [1] : vector<8x8xf32> to vector<8xf32>
    %61 = vector.shape_cast %60 : vector<8xf32> to vector<8x1xf32>
    %62 = arith.addf %59, %61 : vector<8x1xf32>
    %c0_36 = arith.constant 0 : index
    %c1_37 = arith.constant 1 : index
    %63 = vector.load %arg13[%c0_36, %c1_37] : memref<8x4xf32, #tpu.memory_space<vmem>>, vector<8x1xf32>
    tpu.vector_store %arg13[%c0_36, %c1_37], %62 {strides = array<i32>} : memref<8x4xf32, #tpu.memory_space<vmem>>, vector<8x1xf32>,
    %c0_38 = arith.constant 0 : index
    %c8 = arith.constant 8 : index
    %64 = vector.load %arg14[%c0_38, %c8] : memref<8x32xf32, #tpu.memory_space<vmem>>, vector<8x8xf32>
    %65 = vector.broadcast %54 : vector<8x1xf32> to vector<8x8xf32>
    %66 = arith.mulf %65, %64 : vector<8x8xf32>
    %67 = vector.extract_strided_slice %16 {offsets = [0, 8], sizes = [8, 8], strides = [1, 1]} : vector<8x32xf32> to vector<8x8xf32>
    %cst_39 = arith.constant dense<0.000000e+00> : vector<8x8xf32>
    %68 = tpu.matmul %57, %67, %cst_39 {dimension_numbers = #tpu.dot_dimension_numbers<[1], [0], [0], [1], [0, 0, 1, 1], [], []>} : vector<8x8xf32>, vector<8x8xf32>, vector<8x8xf32> -> vector<8x8xf32>
    %69 = arith.addf %66, %68 : vector<8x8xf32>
    %c0_40 = arith.constant 0 : index
    %c8_41 = arith.constant 8 : index
    %70 = vector.load %arg14[%c0_40, %c8_41] : memref<8x32xf32, #tpu.memory_space<vmem>>, vector<8x8xf32>
    tpu.vector_store %arg14[%c0_40, %c8_41], %69 {strides = array<i32>} : memref<8x32xf32, #tpu.memory_space<vmem>>, vector<8x8xf32>,
    %c0_42 = arith.constant 0 : index
    %c1_43 = arith.constant 1 : index
    %71 = vector.load %arg12[%c0_42, %c1_43] : memref<8x4xf32, #tpu.memory_space<vmem>>, vector<8x1xf32>
    tpu.vector_store %arg12[%c0_42, %c1_43], %52 {strides = array<i32>} : memref<8x4xf32, #tpu.memory_space<vmem>>, vector<8x1xf32>,
    %72 = vector.extract_strided_slice %17 {offsets = [0, 16], sizes = [8, 8], strides = [1, 1]} : vector<8x32xf32> to vector<8x8xf32>
    %73 = vector.extract_strided_slice %14 {offsets = [0, 16], sizes = [8, 8], strides = [1, 1]} : vector<8x32xf32> to vector<8x8xf32>
    "tpu.trace_start"() <{level = 10 : i32, message = "qd,kd->qk"}> : () -> ()
    %cst_44 = arith.constant dense<0.000000e+00> : vector<8x8xf32>
    %74 = tpu.matmul %72, %73, %cst_44 {dimension_numbers = #tpu.dot_dimension_numbers<[1], [1], [0], [0], [0, 0, 1, 0], [], []>} : vector<8x8xf32>, vector<8x8xf32>, vector<8x8xf32> -> vector<8x8xf32>
    "tpu.trace_stop"() : () -> ()
    %75 = arith.addf %74, %12 : vector<8x8xf32>
    %c0_45 = arith.constant 0 : index
    %c2 = arith.constant 2 : index
    %76 = vector.load %arg12[%c0_45, %c2] : memref<8x4xf32, #tpu.memory_space<vmem>>, vector<8x1xf32>
    %cst_46 = arith.constant dense<0xFF800000> : vector<8xf32>
    %77 = vector.multi_reduction <maximumf>, %75, %cst_46 [1] : vector<8x8xf32> to vector<8xf32>
    %78 = vector.shape_cast %77 : vector<8xf32> to vector<8x1xf32>
    %79 = arith.maximumf %76, %78 : vector<8x1xf32>
    %80 = arith.subf %76, %79 : vector<8x1xf32>
    %81 = math.exp %80 : vector<8x1xf32>
    %82 = vector.broadcast %79 : vector<8x1xf32> to vector<8x8xf32>
    %83 = arith.subf %75, %82 : vector<8x8xf32>
    %84 = math.exp %83 : vector<8x8xf32>
    %c0_47 = arith.constant 0 : index
    %c2_48 = arith.constant 2 : index
    %85 = vector.load %arg13[%c0_47, %c2_48] : memref<8x4xf32, #tpu.memory_space<vmem>>, vector<8x1xf32>
    %86 = arith.mulf %81, %85 : vector<8x1xf32>
    %cst_49 = arith.constant dense<0.000000e+00> : vector<8xf32>
    %87 = vector.multi_reduction <add>, %84, %cst_49 [1] : vector<8x8xf32> to vector<8xf32>
    %88 = vector.shape_cast %87 : vector<8xf32> to vector<8x1xf32>
    %89 = arith.addf %86, %88 : vector<8x1xf32>
    %c0_50 = arith.constant 0 : index
    %c2_51 = arith.constant 2 : index
    %90 = vector.load %arg13[%c0_50, %c2_51] : memref<8x4xf32, #tpu.memory_space<vmem>>, vector<8x1xf32>
    tpu.vector_store %arg13[%c0_50, %c2_51], %89 {strides = array<i32>} : memref<8x4xf32, #tpu.memory_space<vmem>>, vector<8x1xf32>,
    %c0_52 = arith.constant 0 : index
    %c16 = arith.constant 16 : index
    %91 = vector.load %arg14[%c0_52, %c16] : memref<8x32xf32, #tpu.memory_space<vmem>>, vector<8x8xf32>
    %92 = vector.broadcast %81 : vector<8x1xf32> to vector<8x8xf32>
    %93 = arith.mulf %92, %91 : vector<8x8xf32>
    %94 = vector.extract_strided_slice %16 {offsets = [0, 16], sizes = [8, 8], strides = [1, 1]} : vector<8x32xf32> to vector<8x8xf32>
    %cst_53 = arith.constant dense<0.000000e+00> : vector<8x8xf32>
    %95 = tpu.matmul %84, %94, %cst_53 {dimension_numbers = #tpu.dot_dimension_numbers<[1], [0], [0], [1], [0, 0, 1, 1], [], []>} : vector<8x8xf32>, vector<8x8xf32>, vector<8x8xf32> -> vector<8x8xf32>
    %96 = arith.addf %93, %95 : vector<8x8xf32>
    %c0_54 = arith.constant 0 : index
    %c16_55 = arith.constant 16 : index
    %97 = vector.load %arg14[%c0_54, %c16_55] : memref<8x32xf32, #tpu.memory_space<vmem>>, vector<8x8xf32>
    tpu.vector_store %arg14[%c0_54, %c16_55], %96 {strides = array<i32>} : memref<8x32xf32, #tpu.memory_space<vmem>>, vector<8x8xf32>,
    %c0_56 = arith.constant 0 : index
    %c2_57 = arith.constant 2 : index
    %98 = vector.load %arg12[%c0_56, %c2_57] : memref<8x4xf32, #tpu.memory_space<vmem>>, vector<8x1xf32>
    tpu.vector_store %arg12[%c0_56, %c2_57], %79 {strides = array<i32>} : memref<8x4xf32, #tpu.memory_space<vmem>>, vector<8x1xf32>,
    %99 = vector.extract_strided_slice %17 {offsets = [0, 24], sizes = [8, 8], strides = [1, 1]} : vector<8x32xf32> to vector<8x8xf32>
    %100 = vector.extract_strided_slice %14 {offsets = [0, 24], sizes = [8, 8], strides = [1, 1]} : vector<8x32xf32> to vector<8x8xf32>
    "tpu.trace_start"() <{level = 10 : i32, message = "qd,kd->qk"}> : () -> ()
    %cst_58 = arith.constant dense<0.000000e+00> : vector<8x8xf32>
    %101 = tpu.matmul %99, %100, %cst_58 {dimension_numbers = #tpu.dot_dimension_numbers<[1], [1], [0], [0], [0, 0, 1, 0], [], []>} : vector<8x8xf32>, vector<8x8xf32>, vector<8x8xf32> -> vector<8x8xf32>
    "tpu.trace_stop"() : () -> ()
    %102 = arith.addf %101, %12 : vector<8x8xf32>
    %c0_59 = arith.constant 0 : index
    %c3 = arith.constant 3 : index
    %103 = vector.load %arg12[%c0_59, %c3] : memref<8x4xf32, #tpu.memory_space<vmem>>, vector<8x1xf32>
    %cst_60 = arith.constant dense<0xFF800000> : vector<8xf32>
    %104 = vector.multi_reduction <maximumf>, %102, %cst_60 [1] : vector<8x8xf32> to vector<8xf32>
    %105 = vector.shape_cast %104 : vector<8xf32> to vector<8x1xf32>
    %106 = arith.maximumf %103, %105 : vector<8x1xf32>
    %107 = arith.subf %103, %106 : vector<8x1xf32>
    %108 = math.exp %107 : vector<8x1xf32>
    %109 = vector.broadcast %106 : vector<8x1xf32> to vector<8x8xf32>
    %110 = arith.subf %102, %109 : vector<8x8xf32>
    %111 = math.exp %110 : vector<8x8xf32>
    %c0_61 = arith.constant 0 : index
    %c3_62 = arith.constant 3 : index
    %112 = vector.load %arg13[%c0_61, %c3_62] : memref<8x4xf32, #tpu.memory_space<vmem>>, vector<8x1xf32>
    %113 = arith.mulf %108, %112 : vector<8x1xf32>
    %cst_63 = arith.constant dense<0.000000e+00> : vector<8xf32>
    %114 = vector.multi_reduction <add>, %111, %cst_63 [1] : vector<8x8xf32> to vector<8xf32>
    %115 = vector.shape_cast %114 : vector<8xf32> to vector<8x1xf32>
    %116 = arith.addf %113, %115 : vector<8x1xf32>
    %c0_64 = arith.constant 0 : index
    %c3_65 = arith.constant 3 : index
    %117 = vector.load %arg13[%c0_64, %c3_65] : memref<8x4xf32, #tpu.memory_space<vmem>>, vector<8x1xf32>
    tpu.vector_store %arg13[%c0_64, %c3_65], %116 {strides = array<i32>} : memref<8x4xf32, #tpu.memory_space<vmem>>, vector<8x1xf32>,
    %c0_66 = arith.constant 0 : index
    %c24 = arith.constant 24 : index
    %118 = vector.load %arg14[%c0_66, %c24] : memref<8x32xf32, #tpu.memory_space<vmem>>, vector<8x8xf32>
    %119 = vector.broadcast %108 : vector<8x1xf32> to vector<8x8xf32>
    %120 = arith.mulf %119, %118 : vector<8x8xf32>
    %121 = vector.extract_strided_slice %16 {offsets = [0, 24], sizes = [8, 8], strides = [1, 1]} : vector<8x32xf32> to vector<8x8xf32>
    %cst_67 = arith.constant dense<0.000000e+00> : vector<8x8xf32>
    %122 = tpu.matmul %111, %121, %cst_67 {dimension_numbers = #tpu.dot_dimension_numbers<[1], [0], [0], [1], [0, 0, 1, 1], [], []>} : vector<8x8xf32>, vector<8x8xf32>, vector<8x8xf32> -> vector<8x8xf32>
    %123 = arith.addf %120, %122 : vector<8x8xf32>
    %c0_68 = arith.constant 0 : index
    %c24_69 = arith.constant 24 : index
    %124 = vector.load %arg14[%c0_68, %c24_69] : memref<8x32xf32, #tpu.memory_space<vmem>>, vector<8x8xf32>
    tpu.vector_store %arg14[%c0_68, %c24_69], %123 {strides = array<i32>} : memref<8x32xf32, #tpu.memory_space<vmem>>, vector<8x8xf32>,
    %c0_70 = arith.constant 0 : index
    %c3_71 = arith.constant 3 : index
    %125 = vector.load %arg12[%c0_70, %c3_71] : memref<8x4xf32, #tpu.memory_space<vmem>>, vector<8x1xf32>
    tpu.vector_store %arg12[%c0_70, %c3_71], %106 {strides = array<i32>} : memref<8x4xf32, #tpu.memory_space<vmem>>, vector<8x1xf32>,
    %c0_i32_72 = arith.constant 0 : i32
    %126 = arith.cmpi eq, %arg2, %c0_i32_72 : i32
    %127 = arith.extui %126 : i1 to i32
    %c0_i32_73 = arith.constant 0 : i32
    %128 = arith.cmpi ne, %127, %c0_i32_73 : i32
    scf.if %128 {
      %c0_74 = arith.constant 0 : index
      %c0_75 = arith.constant 0 : index
      %129 = vector.load %arg13[%c0_74, %c0_75] : memref<8x4xf32, #tpu.memory_space<vmem>>, vector<8x1xf32>
      %130 = tpu.reciprocal %129 : vector<8x1xf32> -> vector<8x1xf32>
      %c0_76 = arith.constant 0 : index
      %c0_77 = arith.constant 0 : index
      %131 = vector.load %arg14[%c0_76, %c0_77] : memref<8x32xf32, #tpu.memory_space<vmem>>, vector<8x8xf32>
      %132 = vector.broadcast %130 : vector<8x1xf32> to vector<8x8xf32>
      %133 = arith.mulf %131, %132 : vector<8x8xf32>
      %c0_78 = arith.constant 0 : index
      %c1_79 = arith.constant 1 : index
      %134 = vector.load %arg13[%c0_78, %c1_79] : memref<8x4xf32, #tpu.memory_space<vmem>>, vector<8x1xf32>
      %135 = tpu.reciprocal %134 : vector<8x1xf32> -> vector<8x1xf32>
      %c0_80 = arith.constant 0 : index
      %c8_81 = arith.constant 8 : index
      %136 = vector.load %arg14[%c0_80, %c8_81] : memref<8x32xf32, #tpu.memory_space<vmem>>, vector<8x8xf32>
      %137 = vector.broadcast %135 : vector<8x1xf32> to vector<8x8xf32>
      %138 = arith.mulf %136, %137 : vector<8x8xf32>
      %c0_82 = arith.constant 0 : index
      %c2_83 = arith.constant 2 : index
      %139 = vector.load %arg13[%c0_82, %c2_83] : memref<8x4xf32, #tpu.memory_space<vmem>>, vector<8x1xf32>
      %140 = tpu.reciprocal %139 : vector<8x1xf32> -> vector<8x1xf32>
      %c0_84 = arith.constant 0 : index
      %c16_85 = arith.constant 16 : index
      %141 = vector.load %arg14[%c0_84, %c16_85] : memref<8x32xf32, #tpu.memory_space<vmem>>, vector<8x8xf32>
      %142 = vector.broadcast %140 : vector<8x1xf32> to vector<8x8xf32>
      %143 = arith.mulf %141, %142 : vector<8x8xf32>
      %c0_86 = arith.constant 0 : index
      %c3_87 = arith.constant 3 : index
      %144 = vector.load %arg13[%c0_86, %c3_87] : memref<8x4xf32, #tpu.memory_space<vmem>>, vector<8x1xf32>
      %145 = tpu.reciprocal %144 : vector<8x1xf32> -> vector<8x1xf32>
      %c0_88 = arith.constant 0 : index
      %c24_89 = arith.constant 24 : index
      %146 = vector.load %arg14[%c0_88, %c24_89] : memref<8x32xf32, #tpu.memory_space<vmem>>, vector<8x8xf32>
      %147 = vector.broadcast %145 : vector<8x1xf32> to vector<8x8xf32>
      %148 = arith.mulf %146, %147 : vector<8x8xf32>
      %149 = tpu.concatenate %133, %138, %143, %148 in 1 : vector<8x8xf32>, vector<8x8xf32>, vector<8x8xf32>, vector<8x8xf32> -> vector<8x32xf32>
      %c0_90 = arith.constant 0 : index
      %c0_91 = arith.constant 0 : index
      %150 = vector.load %arg8[%c0_90, %c0_91] : memref<32x32xf32, #tpu.memory_space<vmem>>, vector<32x32xf32>
      %cst_92 = arith.constant dense<0.000000e+00> : vector<8x32xf32>
      %151 = tpu.matmul %149, %150, %cst_92 {dimension_numbers = #tpu.dot_dimension_numbers<[1], [0], [0], [1], [0, 0, 1, 1], [], []>} : vector<8x32xf32>, vector<32x32xf32>, vector<8x32xf32> -> vector<8x32xf32>
      %c0_93 = arith.constant 0 : index
      %c0_94 = arith.constant 0 : index
      %152 = vector.load %arg9[%c0_93, %c0_94] : memref<1x32xf32, #tpu.memory_space<vmem>>, vector<1x32xf32>
      %153 = vector.broadcast %152 : vector<1x32xf32> to vector<8x32xf32>
      %154 = arith.addf %151, %153 : vector<8x32xf32>
      %c0_95 = arith.constant 0 : index
      %c0_96 = arith.constant 0 : index
      %c0_97 = arith.constant 0 : index
      %155 = vector.load %arg10[%c0_95, %c0_96, %c0_97] : memref<1x8x32xf32, #tpu.memory_space<vmem>>, vector<1x8x32xf32>
      %156 = vector.shape_cast %155 : vector<1x8x32xf32> to vector<8x32xf32>
      %157 = vector.shape_cast %154 : vector<8x32xf32> to vector<1x8x32xf32>
      tpu.vector_store %arg10[%c0_95, %c0_96, %c0_97], %157 {strides = array<i32>} : memref<1x8x32xf32, #tpu.memory_space<vmem>>, vector<1x8x32xf32>,
    } else {
    }
    return
  }
  func.func @transform_0(%arg0: i32, %arg1: i32, %arg2: i32) -> (i32, i32, i32) {
    %c0_i32 = arith.constant 0 : i32
    %c0_i32_0 = arith.constant 0 : i32
    return %arg0, %arg2, %c0_i32 : i32, i32, i32
  }
  func.func @transform_1(%arg0: i32, %arg1: i32, %arg2: i32) -> (i32, i32, i32) {
    %c0_i32 = arith.constant 0 : i32
    %c0_i32_0 = arith.constant 0 : i32
    return %arg0, %arg2, %c0_i32 : i32, i32, i32
  }
  func.func @transform_2(%arg0: i32, %arg1: i32, %arg2: i32) -> (i32, i32, i32) {
    %c0_i32 = arith.constant 0 : i32
    %c0_i32_0 = arith.constant 0 : i32
    return %arg0, %arg1, %c0_i32 : i32, i32, i32
  }
  func.func @transform_3(%arg0: i32, %arg1: i32, %arg2: i32) -> (i32, i32, i32, i32) {
    %c0_i32 = arith.constant 0 : i32
    %c0_i32_0 = arith.constant 0 : i32
    return %arg0, %c0_i32, %arg1, %arg2 : i32, i32, i32, i32
  }
  func.func @transform_4(%arg0: i32, %arg1: i32, %arg2: i32) -> (i32, i32) {
    %c0_i32 = arith.constant 0 : i32
    %c0_i32_0 = arith.constant 0 : i32
    %c0_i32_1 = arith.constant 0 : i32
    return %c0_i32, %c0_i32_0 : i32, i32
  }
  func.func @transform_5(%arg0: i32, %arg1: i32, %arg2: i32) -> (i32, i32) {
    %c0_i32 = arith.constant 0 : i32
    %c0_i32_0 = arith.constant 0 : i32
    %c0_i32_1 = arith.constant 0 : i32
    return %c0_i32, %c0_i32_0 : i32, i32
  }
  func.func @transform_6(%arg0: i32, %arg1: i32, %arg2: i32) -> (i32, i32) {
    %c0_i32 = arith.constant 0 : i32
    %c0_i32_0 = arith.constant 0 : i32
    %c0_i32_1 = arith.constant 0 : i32
    return %c0_i32, %c0_i32_0 : i32, i32
  }
  func.func @transform_7(%arg0: i32, %arg1: i32, %arg2: i32) -> (i32, i32, i32) {
    %c0_i32 = arith.constant 0 : i32
    %c0_i32_0 = arith.constant 0 : i32
    return %arg0, %arg1, %c0_i32 : i32, i32, i32
  }
}

</mosaic_0001>

<bundles_post_ra>
// kernel: tpu_custom_call.1
= control target key start
LH: loop header
LB: loop body
LE: loop exit
PB: predicated region body
PF: predicated region fallthrough
CT: control target
= control target key end

     0   :  { %s1969_s0 = inlined_call_operand.hbm [shape: f32[2,8,32], index: 0, kind: input, shape index: {}]   ;;  %s1970_s1 = inlined_call_operand.hbm [shape: f32[2,8,32], index: 1, kind: input, shape index: {}]   ;;  %s1971_s2 = inlined_call_operand.hbm [shape: f32[2,8,32], index: 2, kind: input, shape index: {}]   ;;  %s1972_s3 = inlined_call_operand.hbm [shape: f32[2,1,8,8], index: 3, kind: input, shape index: {}]   ;;  %s1973_s4 = inlined_call_operand.hbm [shape: f32[32,32], index: 4, kind: input, shape index: {}]   ;;  %s1974_s5 = inlined_call_operand.hbm [shape: f32[32,32], index: 5, kind: input, shape index: {}]   ;;  %s1975_s6 = inlined_call_operand.vmem [shape: f32[1,32], index: 6, kind: input, shape index: {}]   ;;  %s1976_s7 = inlined_call_operand.hbm [shape: f32[2,8,32], index: 7, kind: output, shape index: {}]  }
   0x1   :  { %1984 = sst [smem:[#allocation29_spill]] %s1969_s0 }
   0x2   :  { %1985 = sst [smem:[#allocation30_spill]] %s1970_s1 }
   0x3   :  { %1986 = sst [smem:[#allocation31_spill]] %s1973_s4 }
   0x4   :  { %1987 = sst [smem:[#allocation32_spill]] %s1974_s5 }
   0x5   :  { %12 = vsyncpa [#allocation7], 0 }
   0x6   :  { %14 = vsyncpa [#allocation7 + $0x1], 0 }
   0x7   :  { %15 = vsyncpa [#allocation10], 0 }
   0x8   :  { %17 = vsyncpa [#allocation10 + $0x1], 0 }
   0x9   :  { %18 = vsyncpa [#allocation13], 0 }
   0xa   :  { %20 = vsyncpa [#allocation13 + $0x1], 0 }
   0xb   :  { %21 = vsyncpa [#allocation16], 0 }
   0xc   :  { %22 = vsyncpa [#allocation8], 0 }
   0xd   :  { %24 = vsyncpa [#allocation8 + $0x1], 0  ;;  %s1676_s24 = smov 0   ;;  %s1678_s25 = smov 0  }
   0xe   :  { %s1680_s26 = smov 0   ;;  %s1682_s27 = smov 0  }
   0xf   :  { %s1684_s28 = smov 0   ;;  %s1686_s29 = smov 0  }
  0x10 LB: > { %1988 = sst [smem:[#allocation24_spill]] %s1606_s26  ;;  %s1707_s30 = sadd.s32 4294967295, %s1618_s29   ;;  %s1618_s29 = sphi %s1686_s29, %s30_s29   ;;  %s1614_s28 = sphi %s1684_s28, %s2010_s28   ;;  %s1610_s27 = sphi %s1682_s27, %s2009_s27   ;;  %s1606_s26 = sphi %s1680_s26, %s2008_s26   ;;  %s1602_s25 = sphi %s1678_s25, %s2012_s25   ;;  %s1598_s24 = sphi %s1676_s24, %s2011_s24  }
  0x11   : > { %1989 = sst [smem:[#allocation25_spill]] %s1614_s28  ;;  %s1158_s8 = sadd.s32 4294967294, %s1618_s29  }
  0x12   : > { %p71_p0 = scmp.ne.s32.totalorder %s1602_s25, %s1598_s24  ;;  %p72_p1 = scmp.eq.s32.totalorder %s1707_s30, 0 }
  0x13   : > { %p246_p2 = scmp.eq.s32.totalorder %s1707_s30, 1  ;;  %p252_p3 = scmp.eq.s32.totalorder %s1158_s8, 1 }
  0x14   : > { %p1716_p4 = por %p72_p1, %p71_p0  ;;  %p1159_p5 = scmp.ge.s32.totalorder %s1618_s29, 1 }
  0x15   : > { %p1721_p6 = por %p252_p3, %p71_p0  ;;  %p259_p7 = scmp.lt.s32.totalorder %s1618_s29, 3 }
  0x16   : > { %s1993_s4 = sld [smem:[#allocation31_spill]]  ;;  %s1620_s15 = smov [#allocation14]  }
  0x17   : > { %s1991_s10 = scalar_select %p1721_p6, 1, 0 }
  0x18   : > { %p1729_p8 = pnand %p1159_p5, %p259_p7  ;;  %s272_s16 = sshll.u32 %s1620_s15, 4  ;;  %s273_s16 = int_to_ptr.vmem [resolvable:$true] %s272_s16 }
  0x19   : > { %1992 = sst [smem:[#allocation26_spill]] %s1991_s10  ;;  %p1162_p11 = scmp.ge.s32.totalorder %s1618_s29, 2 }
  0x1a   : > { %p1217_p9 = pneg %p1729_p8  ;;  %s1977_s18 = smov 128  }
  0x1b   : > { %s1978_s19 = smov 8   ;;  %s49_s20 = sadd.s32 1, %s1614_s28 }
  0x1c   : > { %s270_s13 = sshll.u32 %s1993_s4, 4  ;;  %p1737_p10 = pnand %p1217_p9, %p72_p1  ;;  %s271_s13 = int_to_ptr.hbm [resolvable:$true] %s270_s13 }
  0x1d   : > { %p51_p12 = scmp.ge.s32.totalorder %s49_s20, 2  ;;  %s58_s21 = sadd.s32 1, %s1606_s26 }
  0x1e   : > { %1220 = dma.hbm_to_vmem [thread:$0]  (!%p1737_p10), %s271_s13, 512, %s273_s16, [#allocation13], %s1977_s18, %s1977_s18, %s1978_s19  }
  0x1f   : > { %p65_p13 = scmp.ne.s32.totalorder %s1606_s26, %s1602_s25  ;;  %p66_p0 = scmp.eq.s32.totalorder %s1618_s29, 0 }
  0x20   : > { %s2014_s20 = smov (%p51_p12, %s49_s20), 0  ;;  %p1243_p7 = scmp.lt.s32.totalorder %s1618_s29, 2 }
  0x21   : > { %1996 = sst [smem:[#allocation27_spill]] %s2014_s20  ;;  %p67_p3 = por %p66_p0, %p65_p13 }
  0x22   : > { %p1756_p5 = por %p246_p2, %p65_p13  ;;  %s53_s23 = ssub.s32 %s1614_s28, %s2014_s20 }
  0x23   : > { %p56_p9 = scmp.eq.s32.totalorder %s53_s23, 0  ;;  %s303_s8 = sand.u32 1, %s1606_s26  }
  0x24   : > { %s1764_s11 = sshll.u32 %s303_s8, 3  ;;  %s1767_s12 = sshll.u32 %s1614_s28, 3 }
  0x25   : > { %s1770_s13 = scalar_select %p56_p9, %s1606_s26, %s58_s21  }
  0x26   : > { %p1772_p12 = pnand %p1243_p7, %p67_p3  ;;  %s1983_s16 = sand.u32 1, %s1618_s29  }
  0x27   : > { %1998 = sst [smem:[#allocation28_spill]] %s1770_s13  ;;  %s327_s20 = scalar_lea.vmem [#allocation9], %s1764_s11 }
  0x28   : > { %s2000_s1 = sld [smem:[#allocation30_spill]]  ;;  %s336_s28 = sshll.u32 %s327_s20, 4  ;;  %s337_s28 = int_to_ptr.vmem [resolvable:$true] %s336_s28 }
  0x29   : > { %s324_s21 = scalar_lea.sflag [#allocation10], %s1983_s16  ;;  %s2001_s5 = sld [smem:[#allocation32_spill]] }
  0x2a   : > { %s1623_s18 = smov [#allocation15]   ;;  %s2003_s20 = smov 128  }
  0x2b   : > { %s286_s19 = sshll.u32 %s1623_s18, 4  ;;  %s2004_s0 = sld [smem:[#allocation29_spill]]  ;;  %s287_s19 = int_to_ptr.vmem [resolvable:$true] %s286_s19 }
  0x2c   : > { %s304_s18 = scalar_lea.sflag [#allocation7], %s303_s8 }
  0x2e   : > { %s332_s23 = scalar_lea.hbm %s2000_s1, %s1767_s12 }
  0x2f   : > { %s334_s4 = sshll.u32 %s332_s23, 4  ;;  %s284_s10 = sshll.u32 %s2001_s5, 4  ;;  %s335_s4 = int_to_ptr.hbm [resolvable:$true] %s334_s4  ;;  %s285_s10 = int_to_ptr.hbm [resolvable:$true] %s284_s10 }
  0x30   : > { %1230 = dma.hbm_to_vmem [thread:$0]  (!%p1772_p12), %s335_s4, 128, %s337_s28, %s324_s21  }
  0x31   : > { %s2002_s23 = smov 8   ;;  %s312_s4 = scalar_lea.hbm %s2004_s0, %s1767_s12 }
  0x32   : > { %1223 = dma.hbm_to_vmem [thread:$0]  (!%p1737_p10), %s285_s10, 512, %s287_s19, [#allocation16], %s2003_s20, %s2003_s20, %s2002_s23  }
  0x33   : > { %s307_s28 = scalar_lea.vmem [#allocation6], %s1764_s11  ;;  %s314_s13 = sshll.u32 %s312_s4, 4  ;;  %s315_s13 = int_to_ptr.hbm [resolvable:$true] %s314_s13 }
  0x34   : > { %s316_s26 = sshll.u32 %s307_s28, 4  ;;  %s352_s10 = scalar_lea.hbm %s1971_s2, %s1767_s12  ;;  %s317_s26 = int_to_ptr.vmem [resolvable:$true] %s316_s26 }
  0x35   : > { %1227 = dma.hbm_to_vmem [thread:$0]  (!%p1772_p12), %s315_s13, 128, %s317_s26, %s304_s18  }
  0x36   : > { %s347_s19 = scalar_lea.vmem [#allocation11], %s1764_s11  ;;  %s354_s1 = sshll.u32 %s352_s10, 4  ;;  %s355_s1 = int_to_ptr.hbm [resolvable:$true] %s354_s1 }
  0x37   : > { %s356_s23 = sshll.u32 %s347_s19, 4  ;;  %s373_s4 = scalar_lea.hbm %s1972_s3, %s1767_s12  ;;  %s357_s23 = int_to_ptr.vmem [resolvable:$true] %s356_s23 }
  0x38   : > { %1233 = dma.hbm_to_vmem [thread:$0]  (!%p1772_p12), %s355_s1, 128, %s357_s23, %s324_s21  }
  0x39   : > { %s367_s28 = scalar_lea.vmem [#allocation12], %s1764_s11  ;;  %s375_s0 = sshll.u32 %s373_s4, 4  ;;  %s376_s0 = int_to_ptr.hbm [resolvable:$true] %s375_s0 }
  0x3a   : > { %s377_s8 = sshll.u32 %s367_s28, 4  ;;  %s2005_s26 = sand.u32 1, %s1618_s29   ;;  %s378_s8 = int_to_ptr.vmem [resolvable:$true] %s377_s8 }
  0x3b   : > { %s364_s13 = scalar_lea.sflag [#allocation13], %s2005_s26  ;;  %386 = sbr.rel (%p1729_p8) target bundleno = 1139 (0x473), region = 48 }
  0x3c   : > { %1236 = dma.hbm_to_vmem [thread:$0]  (!%p1772_p12), %s376_s0, 128, %s378_s8, %s364_s13  }
  0x3d   : > { %s1820_s5 = sand.u32 (!%p1729_p8), 1, %s1602_s25  }
  0x3e   : > { %s1823_s21 = sshll.u32 (!%p1729_p8), %s1820_s5, 3  ;;  %s389_s11 = scalar_lea.sflag (!%p1729_p8), [#allocation7], %s1820_s5 }
  0x3f   : > { %s392_s12 = scalar_lea.vmem (!%p1729_p8), [#allocation6], %s1823_s21 }
  0x40   : > { %1573 = dma.done.wait (%p1716_p4), %s389_s11, 128  }
  0x41   : > { %1575 = vsyncadd (%p1716_p4), %s389_s11, 4294967168  ;;  %s398_s0 = sand.u32 1, %s1707_s30   ;;  %s402_s15 = scalar_lea.vmem [#allocation9], %s1823_s21 }
  0x42   : > { %s399_s14 = scalar_lea.sflag [#allocation10], %s398_s0 }
  0x43   : > { %1577 = dma.done.wait (%p1716_p4), %s399_s14, 256  }
  0x44   : > { %1579 = vsyncadd (%p1716_p4), %s399_s14, 4294967040  ;;  %s412_s18 = scalar_lea.vmem [#allocation11], %s1823_s21  ;;  %s419_s17 = scalar_lea.sflag [#allocation13], %s398_s0 }
  0x45   : > { %s422_s10 = scalar_lea.vmem [#allocation12], %s1823_s21 }
  0x46   : > { %1581 = dma.done.wait (%p1716_p4), %s419_s17, 128  }
  0x47   : > { %1583 = vsyncadd (%p1716_p4), %s419_s17, 4294967168 }
  0x48   : > { %1585 = dma.done.wait (%p72_p1), [#allocation13], 512  }
  0x49   : > { %1587 = vsyncadd (%p72_p1), [#allocation13], 4294966784 }
  0x4a   : > { %1589 = dma.done.wait (%p72_p1), [#allocation16], 512  }
  0x4b   : > { %1591 = vsyncadd (%p72_p1), [#allocation16], 4294966784  ;;  %v487_v0 = vld [vmem:[#allocation14 + $0x18] sm:$0xff]  ;;  %v486_v1 = vld [vmem:[#allocation14 + $0x10] sm:$0xff]  ;;  %vm488_vm0 = vcmask 261120   ;;  %s1624_s9 = smov 104  }
  0x4c   : > { %504 = vmatpush.msra.mxu0 %v487_v0  ;;  %v485_v2 = vld [vmem:[#allocation14 + $0x8] sm:$0xff]  ;;  %v484_v3 = vld [vmem:[#allocation14] sm:$0xff]  ;;  %s1625_s19 = smov 112   ;;  %vm526_vm1 = vcmask 64512   ;;  %s1626_s30 = smov 120   ;;  %vm513_vm2 = vcmask 31744  }
  0x4d   : > { %v483_v4 = vld [vmem:[%s412_s18] sm:$0xff]  ;;  %v1627_v11 = vmov 0.0   ;;  %v517_v13 = vld [vmem:[%s422_s10] sm:$0xff]  ;;  %v1628_v22 = vmov -inf   ;;  %v1629_v23 = vmov 0   ;;  %vm575_vm4 = vcmask 7168  }
  0x4e   : > { %505 = vmatpush.msra.mxu0 %v486_v1  ;;  %v523_v5 = vld [vmem:[%s392_s12] sm:$0xff]  ;;  %515 = vst.msk [vmem:[#allocation4] sm:$0xff] %vm513_vm2, %v1627_v11  ;;  %vm518_vm3 = vcmp.ne.f32.partialorder %v517_v13, 0.0  ;;  %1311 = vset.pattern.permute.xlu0 %v1629_v23  ;;  %v1630_v37 = vmov 1   ;;  %v524_v38 = vld [vmem:[%s402_s15] sm:$0xff]  ;;  %vm660_vm5 = vcmask 15368  }
  0x4f   : > { %799 = vrot.lane.b32.xlu2 %v523_v5, %s1624_s9  ;;  %706 = vrot.lane.b32.xlu1 %v523_v5, %s1625_s19  ;;  %516 = vst.msk [vmem:[#allocation5] sm:$0xff] %vm488_vm0, %v1627_v11  ;;  %v1180_v16 = vsel %vm518_vm3, 1.0, %v1627_v11  ;;  %vm754_vm6 = vcmask 23568   ;;  %v1631_v51 = vmov 2   ;;  %vm847_vm7 = vcmask 31768   ;;  %s1633_s23 = smov 8  }
  0x50   : > { %506 = vmatpush.msra.mxu0 %v485_v2  ;;  %612 = vrot.lane.b32.xlu0 %v523_v5, %s1626_s30  ;;  %v1181_v17 = vadd.f32 -1.0, %v1180_v16  ;;  %514 = vst.msk [vmem:[#allocation3] sm:$0xff] %vm513_vm2, %v1628_v22  ;;  %v1632_v56 = vmov 3   ;;  %s1634_s1 = smov 16   ;;  %s1635_s16 = smov 24   ;;  %vm701_vm12 = vcmask 130112  }
  0x51   : > { %1182 = vmatpush.xpose.msk.msra.mxu1 %vm526_vm1, %v523_v5  ;;  %1312 = vset.pattern.permute.xlu1 %v1630_v37  ;;  %vm794_vm13 = vcmask 195712   ;;  %vm887_vm14 = vcmask 261312   ;;  %vm931_vm15 = vcmask 130048   ;;  %vm933_vm2 = vcmask 195584   ;;  %s1196_s20 = sshll.u32 %s1610_s27, 3  ;;  %s478_s11 = scalar_lea.vmem [#allocation17], %s1823_s21 }
  0x52   : > { %507 = vmatpush.msra.mxu0 %v484_v3  ;;  %v522_v18 = vmul.f32 3.5355338e+09, %v1181_v17  ;;  %1316 = vset.pattern.permute.xlu2 %v1630_v37  ;;  %s980_s8 = scalar_lea.hbm %s1976_s7, %s1196_s20  ;;  %s982_s12 = sshll.u32 %s478_s11, 4  ;;  %s983_s12 = int_to_ptr.vmem [resolvable:$true] %s982_s12 }
  0x53   : > { %1179 = vmatmul.msk.f32.vlgmr.msra.gmra.mxu0 %vm488_vm0, %v483_v4  ;;  %602 = vmatpush.msra.mxu2 %v524_v38  ;;  %s984_s0 = sshll.u32 %s980_s8, 4  ;;  %s969_s14 = scalar_lea.sflag [#allocation8], %s1820_s5  ;;  %s985_s0 = int_to_ptr.hbm [resolvable:$true] %s984_s0 }
  0x54   : > { %s1534_s27 = sshra.s32 %s985_s0, 4  ;;  %s1540_s21 = scalar_lea.hbm %s1976_s7, 16  ;;  %s1535_s27 = int_to_ptr.hbm [resolvable:$true] %s1534_s27 }
  0x55   : > { %v569_v2 = vld [vmem:[#allocation4] sm:$0xff]  ;;  %s1536_s15 = scalar_lea.hbm %s1535_s27, 8  ;;  %p1541_p8 = scmp.lt.s32.totalorder %s1535_s27, %s1976_s7 }
  0x56   : > { %p1537_p1 = scmp.ne.s32.totalorder %s1535_s27, %s1536_s15  ;;  %p1542_p10 = scmp.lt.s32.totalorder %s1540_s21, %s1536_s15 }
  0x57   : > { %v553_v27 = vld [vmem:[#allocation3] sm:$0xff] }
  0x58   : > { %p1538_p2 = pnand %p1537_p1, %p1756_p5  ;;  %p1543_p13 = por %p1542_p10, %p1541_p8 }
  0x5a   : > { %p1539_p4 = pneg %p1538_p2 }
  0x5c   : > { %p1544_p0 = pnand %p1543_p13, %p1539_p4 }
  0xa9   : > { %v800_v8 = vpop.permute.xlu2 %799 }
  0xaa   : > { %1191 = vmatpush.xpose.msk.msrb.mxu0 %vm526_vm1, %v800_v8 }
  0xc1   : > { %v707_v9 = vpop.permute.xlu1 %706 }
  0xc2   : > { %v613_v10 = vpop.permute.xlu0 %612  ;;  %1188 = vmatpush.xpose.msk.msrb.mxu1 %vm526_vm1, %v707_v9 }
  0xc3   : > { %1185 = vmatpush.xpose.msk.msra.mxu3 %vm526_vm1, %v613_v10 }
  0xd0   : > { %v509_v6 = vpop.f32.mrf.mxu0 }
  0xd1   : > { %512 = vst.msk [vmem:[#allocation2] sm:$0xff] %vm488_vm0, %v509_v6 }
  0xd8   : > { %v525_v7 = vld [vmem:[#allocation2] sm:$0xff] }
  0xd9   : > { %797 = vrot.lane.b32.xlu2 %v525_v7, %s1624_s9  ;;  %704 = vrot.lane.b32.xlu1 %v525_v7, %s1625_s19 }
  0xda   : > { %610 = vrot.lane.b32.xlu0 %v525_v7, %s1626_s30  ;;  %1183 = vmatmul.msk.f32.vlgmr.msra.gmra.mxu1 %vm526_vm1, %v525_v7 }
 0x133   : > { %v798_v12 = vpop.permute.xlu2 %797 }
 0x134   : > { %1192 = vmatmul.msk.f32.vlgmr.msrb.gmra.mxu0 %vm526_vm1, %v798_v12 }
 0x14b   : > { %v705_v14 = vpop.permute.xlu1 %704 }
 0x14c   : > { %v611_v15 = vpop.permute.xlu0 %610  ;;  %1189 = vmatmul.msk.f32.vlgmr.msrb.gmra.mxu1 %vm526_vm1, %v705_v14 }
 0x14d   : > { %1186 = vmatmul.msk.f32.vlgmr.msra.gmra.mxu3 %vm526_vm1, %v611_v15 }
 0x157   : > { %v550_v19 = vpop.f32.mrf.mxu1 }
 0x158   : > { %v551_v20 = vadd.f32 %v550_v19, %v522_v18 }
 0x15a   : > { %v554_v21 = vsel %vm526_vm1, %v551_v20, -inf }
 0x15b   : > { %555 = vmax.xlane.f32.xlu0 %v554_v21 }
 0x1b1   : > { %v822_v28 = vpop.f32.mrf.mxu0 }
 0x1b2   : > { %v1877_v31 = vadd.f32 %v822_v28, %v522_v18 }
 0x1b4   : > { %v826_v36 = vsel %vm526_vm1, %v1877_v31, -inf }
 0x1c9   : > { %v729_v24 = vpop.f32.mrf.mxu1 }
 0x1ca   : > { %v1873_v25 = vadd.f32 %v729_v24, %v522_v18 }
 0x1cc   : > { %v733_v26 = vsel %vm526_vm1, %v1873_v25, -inf }
 0x1cd   : > { %734 = vmax.xlane.f32.xlu2 %v733_v26 }
 0x1ce   : > { %v556_v29 = vpop.xlane.xlu0 %555 }
 0x1cf   : > { %v557_v30 = vmax.f32 %v553_v27, %v556_v29 }
 0x1d0   : > { %v635_v32 = vpop.f32.mrf.mxu3 }
 0x1d1   : > { %v558_v33 = vsub.f32 %v553_v27, %v557_v30  ;;  %609 = vst.msk [vmem:[#allocation3] sm:$0xff] %vm575_vm4, %v557_v30  ;;  %v636_v34 = vadd.f32 %v635_v32, %v522_v18  ;;  %563 = vperm.xlu0 %1311, %v557_v30  }
 0x1d3   : > { %v639_v35 = vsel %vm526_vm1, %v636_v34, -inf  ;;  %v559_v60 = vmul.f32 1.442695, %v558_v33 }
 0x1d4   : > { %640 = vmax.xlane.f32.xlu1 %v639_v35  ;;  %v577_v35 = vld [vmem:[#allocation5] sm:$0xff] }
 0x1d5   : > { %827 = vmax.xlane.f32.xlu2 %v826_v36 }
 0x1d8   : > { %v1890_v43 = vld [vmem:[#allocation3] sm:$0xff] }
 0x1ed   : > { %670 = vrot.lane.b32.xlu2 %v524_v38, %s1626_s30 }
 0x1f5   : > { %763 = vrot.lane.b32.xlu2 %v524_v38, %s1625_s19 }
 0x1fd   : > { %856 = vrot.lane.b32.xlu2 %v524_v38, %s1624_s9 }
 0x240   : > { %v735_v48 = vpop.xlane.xlu2 %734 }
 0x243   : > { %v564_v39 = vpop.permute.xlu0 %563 }
 0x244   : > { %v566_v40 = vsub.f32 %v551_v20, %v564_v39 }
 0x246   : > { %v567_v41 = vmul.f32 1.442695, %v566_v40 }
 0x247   : > { %v641_v42 = vpop.xlane.xlu1 %640 }
 0x248   : > { %1322 = vpow2.f32 %v567_v41  ;;  %v1893_v44 = vmax.f32 %v1890_v43, %v641_v42  ;;  %v828_v53 = vpop.xlane.xlu2 %827 }
 0x249   : > { %1324 = vpow2.f32 %v559_v60 }
 0x24a   : > { %v643_v45 = vsub.f32 %v1890_v43, %v1893_v44  ;;  %703 = vst.msk [vmem:[#allocation3] sm:$0xff] %vm660_vm5, %v1893_v44  ;;  %648 = vperm.xlu1 %1312, %v1893_v44  }
 0x24c   : > { %v644_v18 = vmul.f32 1.442695, %v643_v45 }
 0x24e   : > { %v1323_v46 = vpop.eup %1322 }
 0x24f   : > { %1184 = vmatmul.msk.f32.vlgmr.msra.gmra.mxu2 %vm526_vm1, %v1323_v46  ;;  %v571_v47 = vsel %vm526_vm1, %v1323_v46, 0.0  ;;  %v1325_v0 = vpop.eup %1324 }
 0x250   : > { %572 = vadd.xlane.f32.xlu0 %v571_v47  ;;  %v671_v58 = vpop.permute.xlu2 %670  ;;  %v570_v3 = vmul.f32 %v1325_v0, %v569_v2 }
 0x251   : > { %v732_v49 = vld [vmem:[#allocation3] sm:$0xff]  ;;  %691 = vmatpush.msrb.mxu2 %v671_v58 }
 0x252   : > { %v736_v50 = vmax.f32 %v732_v49, %v735_v48  ;;  %1313 = vset.pattern.permute.xlu1 %v1631_v51 }
 0x254   : > { %796 = vst.msk [vmem:[#allocation3] sm:$0xff] %vm754_vm6, %v736_v50  ;;  %742 = vperm.xlu1 %1313, %v736_v50   ;;  %v737_v52 = vsub.f32 %v732_v49, %v736_v50 }
 0x256   : > { %v738_v19 = vmul.f32 1.442695, %v737_v52 }
 0x258   : > { %v764_v59 = vpop.permute.xlu2 %763 }
 0x259   : > { %784 = vmatpush.msrb.mxu3 %v764_v59 }
 0x25b   : > { %v825_v54 = vld [vmem:[#allocation3] sm:$0xff] }
 0x25c   : > { %v829_v55 = vmax.f32 %v825_v54, %v828_v53  ;;  %1314 = vset.pattern.permute.xlu1 %v1632_v56 }
 0x25e   : > { %v830_v57 = vsub.f32 %v825_v54, %v829_v55  ;;  %889 = vst.msk [vmem:[#allocation3] sm:$0xff] %vm847_vm7, %v829_v55  ;;  %835 = vperm.xlu1 %1314, %v829_v55  }
 0x260   : > { %v857_v61 = vpop.permute.xlu2 %856  ;;  %v831_v21 = vmul.f32 1.442695, %v830_v57 }
 0x261   : > { %877 = vmatpush.msra.mxu2 %v857_v61  ;;  %v938_v61 = vld [vmem:[#allocation15 + $0x18] sm:$0xff] }
 0x262   : > { %959 = vmatpush.msra.mxu1 %v938_v61 }
 0x266   : > { %1315 = vset.pattern.permute.xlu1 %v1629_v23 }
 0x2bc   : > { %v649_v62 = vpop.permute.xlu1 %648 }
 0x2bd   : > { %v651_v63 = vsub.f32 %v636_v34, %v649_v62  ;;  %v937_v62 = vld [vmem:[#allocation15 + $0x10] sm:$0xff] }
 0x2be   : > { %960 = vmatpush.msra.mxu1 %v937_v62 }
 0x2bf   : > { %v652_v1 = vmul.f32 1.442695, %v651_v63 }
 0x2c1   : > { %1326 = vpow2.f32 %v652_v1  ;;  %v936_v1 = vld [vmem:[#allocation15 + $0x8] sm:$0xff] }
 0x2c2   : > { %961 = vmatpush.msra.mxu1 %v936_v1 }
 0x2c3   : > { %v573_v4 = vpop.xlane.xlu0 %572 }
 0x2c4   : > { %v574_v5 = vadd.f32 %v573_v4, %v570_v3 }
 0x2c6   : > { %576 = vst.msk [vmem:[#allocation4] sm:$0xff] %vm575_vm4, %v574_v5  ;;  %v743_v6 = vpop.permute.xlu1 %742 }
 0x2c7   : > { %v1327_v7 = vpop.eup %1326  ;;  %v745_v8 = vsub.f32 %v1873_v25, %v743_v6 }
 0x2c8   : > { %1187 = vmatmul.msk.f32.vlgmr.msrb.gmra.mxu2 %vm526_vm1, %v1327_v7  ;;  %v656_v9 = vsel %vm526_vm1, %v1327_v7, 0.0 }
 0x2c9   : > { %v746_v10 = vmul.f32 1.442695, %v745_v8  ;;  %657 = vadd.xlane.f32.xlu1 %v656_v9 }
 0x2cb   : > { %1328 = vpow2.f32 %v746_v10 }
 0x2cd   : > { %v654_v24 = vld [vmem:[#allocation4] sm:$0xff] }
 0x2d0   : > { %v836_v11 = vpop.permute.xlu1 %835 }
 0x2d1   : > { %v1329_v12 = vpop.eup %1328  ;;  %v838_v13 = vsub.f32 %v1877_v31, %v836_v11 }
 0x2d2   : > { %1190 = vmatmul.msk.f32.vlgmr.msrb.gmra.mxu3 %vm526_vm1, %v1329_v12  ;;  %v750_v14 = vsel %vm526_vm1, %v1329_v12, 0.0  ;;  %v604_v28 = vpop.f32.mrf.mxu2 }
 0x2d3   : > { %v839_v15 = vmul.f32 1.442695, %v838_v13  ;;  %751 = vadd.xlane.f32.xlu2 %v750_v14 }
 0x2d5   : > { %1330 = vpow2.f32 %v839_v15 }
 0x2d6   : > { %1332 = vpow2.f32 %v644_v18 }
 0x2d7   : > { %1334 = vpow2.f32 %v738_v19 }
 0x2d8   : > { %1336 = vpow2.f32 %v831_v21 }
 0x2db   : > { %v1331_v16 = vpop.eup %1330 }
 0x2dc   : > { %1193 = vmatmul.msk.f32.vlgmr.msra.gmra.mxu2 %vm526_vm1, %v1331_v16  ;;  %v843_v17 = vsel %vm526_vm1, %v1331_v16, 0.0  ;;  %v1333_v20 = vpop.eup %1332 }
 0x2dd   : > { %844 = vadd.xlane.f32.xlu0 %v843_v17  ;;  %v1335_v22 = vpop.eup %1334  ;;  %v655_v25 = vmul.f32 %v1333_v20, %v654_v24 }
 0x2de   : > { %v1337_v23 = vpop.eup %1336 }
 0x2e2   : > { %580 = vperm.xlu1 %1315, %v1325_v0  }
 0x2ea   : > { %1317 = vset.pattern.permute.xlu1 %v1631_v51 }
 0x2eb   : > { %665 = vperm.xlu2 %1316, %v1333_v20   ;;  %759 = vperm.xlu1 %1317, %v1335_v22  }
 0x2f3   : > { %1318 = vset.pattern.permute.xlu2 %v1632_v56 }
 0x2f4   : > { %852 = vperm.xlu2 %1318, %v1337_v23  }
 0x2fc   : > { %1319 = vset.pattern.permute.xlu2 %v1630_v37 }
 0x33c   : > { %v658_v26 = vpop.xlane.xlu1 %657 }
 0x33d   : > { %v659_v27 = vadd.f32 %v658_v26, %v655_v25 }
 0x33f   : > { %661 = vst.msk [vmem:[#allocation4] sm:$0xff] %vm660_vm5, %v659_v27 }
 0x346   : > { %v748_v29 = vld [vmem:[#allocation4] sm:$0xff]  ;;  %v752_v31 = vpop.xlane.xlu2 %751 }
 0x347   : > { %v749_v30 = vmul.f32 %v1335_v22, %v748_v29  ;;  %v1321_v22 = vld [vmem:[%s1975_s6] ss:$0 sm:$0xff] }
 0x349   : > { %v753_v32 = vadd.f32 %v752_v31, %v749_v30 }
 0x34b   : > { %755 = vst.msk [vmem:[#allocation4] sm:$0xff] %vm754_vm6, %v753_v32  ;;  %v693_v33 = vpop.f32.mrf.mxu2 }
 0x34c   : > { %697 = vrot.lane.b32.xlu0 %v693_v33, %s1633_s23 }
 0x34e   : > { %v666_v57 = vpop.permute.xlu2 %665 }
 0x350   : > { %v845_v37 = vpop.xlane.xlu0 %844 }
 0x352   : > { %v841_v34 = vld [vmem:[#allocation4] sm:$0xff] }
 0x353   : > { %v842_v36 = vmul.f32 %v1337_v23, %v841_v34 }
 0x354   : > { %v581_v38 = vpop.permute.xlu1 %580 }
 0x355   : > { %v846_v39 = vadd.f32 %v845_v37, %v842_v36  ;;  %v583_v40 = vmul.f32 %v581_v38, %v577_v35  ;;  %v786_v41 = vpop.f32.mrf.mxu3 }
 0x356   : > { %790 = vrot.lane.b32.xlu0 %v786_v41, %s1634_s1  ;;  %v853_v5 = vpop.permute.xlu2 %852 }
 0x357   : > { %848 = vst.msk [vmem:[#allocation4] sm:$0xff] %vm847_vm7, %v846_v39  ;;  %v607_v42 = vadd.f32 %v604_v28, %v583_v40 }
 0x359   : > { %608 = vst.msk [vmem:[#allocation5] sm:$0xff] %vm526_vm1, %v607_v42 }
 0x35d   : > { %v760_v63 = vpop.permute.xlu1 %759 }
 0x35e   : > { %v893_v43 = vld [vmem:[#allocation4] sm:$0xff] }
 0x35f   : > { %v879_v44 = vpop.f32.mrf.mxu2  ;;  %1338 = vrcp.f32 %v893_v43  ;;  %v905_v48 = vand.u32 2147483648, %v893_v43  ;;  %v903_v50 = vand.u32 2147483647, %v893_v43  ;;  %vm899_vm9 = vweird.f32 %v893_v43 }
 0x360   : > { %883 = vrot.lane.b32.xlu1 %v879_v44, %s1635_s16  ;;  %v662_v55 = vld [vmem:[#allocation5] sm:$0xff] }
 0x361   : > { %v906_v52 = vor.u32 1.1754944e-38, %v905_v48  ;;  %vm904_vm11 = vcmp.eq.f32.partialorder %v903_v50, 8.507059e+37  ;;  %v668_v58 = vmul.f32 %v666_v57, %v662_v55 }
 0x365   : > { %v1339_v45 = vpop.eup %1338 }
 0x366   : > { %v895_v46 = vmul.f32 %v1339_v45, %v893_v43  ;;  %vm900_vm8 = vweird.f32 %v1339_v45 }
 0x367   : > { %vm901_vm10 = vmor %vm899_vm9, %vm900_vm8 }
 0x368   : > { %v896_v47 = vsub.f32 1.0, %v895_v46 }
 0x36a   : > { %v897_v49 = vmul.f32 %v1339_v45, %v896_v47 }
 0x36c   : > { %v898_v51 = vadd.f32 %v1339_v45, %v897_v49 }
 0x36e   : > { %v902_v53 = vsel %vm901_vm10, %v1339_v45, %v898_v51 }
 0x36f   : > { %v907_v54 = vsel %vm904_vm11, %v906_v52, %v902_v53 }
 0x370   : > { %921 = vperm.xlu1 %1317, %v907_v54   ;;  %916 = vperm.xlu2 %1319, %v907_v54  }
 0x371   : > { %911 = vperm.xlu0 %1311, %v907_v54  }
 0x379   : > { %1320 = vset.pattern.permute.xlu0 %v1632_v56  ;;  %v935_v56 = vld [vmem:[#allocation15] sm:$0xff] }
 0x37a   : > { %926 = vperm.xlu0 %1320, %v907_v54   ;;  %962 = vmatpush.msra.mxu1 %v935_v56 }
 0x3be   : > { %v698_v59 = vpop.permute.xlu0 %697 }
 0x3bf   : > { %v700_v60 = vadd.f32 %v698_v59, %v668_v58 }
 0x3c1   : > { %702 = vst.msk [vmem:[#allocation5] sm:$0xff] %vm701_vm12, %v700_v60 }
 0x3c8   : > { %v756_v0 = vld [vmem:[#allocation5] sm:$0xff]  ;;  %v791_v3 = vpop.permute.xlu0 %790 }
 0x3c9   : > { %v762_v2 = vmul.f32 %v760_v63, %v756_v0 }
 0x3ca   : > { %v917_v14 = vpop.permute.xlu2 %916 }
 0x3cb   : > { %v793_v4 = vadd.f32 %v791_v3, %v762_v2 }
 0x3cd   : > { %795 = vst.msk [vmem:[#allocation5] sm:$0xff] %vm794_vm13, %v793_v4 }
 0x3d2   : > { %v884_v8 = vpop.permute.xlu1 %883 }
 0x3d4   : > { %v849_v6 = vld [vmem:[#allocation5] sm:$0xff] }
 0x3d5   : > { %v855_v7 = vmul.f32 %v853_v5, %v849_v6 }
 0x3d7   : > { %v886_v9 = vadd.f32 %v884_v8, %v855_v7 }
 0x3d9   : > { %888 = vst.msk [vmem:[#allocation5] sm:$0xff] %vm887_vm14, %v886_v9 }
 0x3e0   : > { %v908_v11 = vld [vmem:[#allocation5] sm:$0xff] }
 0x3e1   : > { %v919_v15 = vmul.f32 %v917_v14, %v908_v11 }
 0x3e2   : > { %v922_v12 = vpop.permute.xlu1 %921 }
 0x3e3   : > { %v912_v10 = vpop.permute.xlu0 %911  ;;  %v924_v16 = vmul.f32 %v922_v12, %v908_v11 }
 0x3e4   : > { %v914_v13 = vmul.f32 %v912_v10, %v908_v11 }
 0x3e6   : > { %v930_v17 = vsel %vm526_vm1, %v914_v13, %v919_v15 }
 0x3e7   : > { %v932_v20 = vsel %vm931_vm15, %v930_v17, %v924_v16 }
 0x3ec   : > { %v927_v18 = vpop.permute.xlu0 %926 }
 0x3ed   : > { %v929_v19 = vmul.f32 %v927_v18, %v908_v11 }
 0x3ef   : > { %v934_v21 = vsel %vm933_vm2, %v932_v20, %v929_v19 }
 0x3f0   : > { %1194 = vmatmul.msk.f32.vlgmr.msra.gmra.mxu1 %vm488_vm0, %v934_v21 }
 0x46d   : > { %v964_v23 = vpop.f32.mrf.mxu1 }
 0x46e   : > { %v965_v24 = vadd.f32 %v1321_v22, %v964_v23 }
 0x470   : > { %967 = vst.msk [vmem:[%s478_s11] sm:$0xff] %vm488_vm0, %v965_v24 }
 0x471   : > { %1547 = shalt.err (!%p1544_p0)
}
 0x472   : > { %1215 = dma.vmem_to_hbm [thread:$0]  (%p1756_p5), %s983_s12, 128, %s985_s0, %s969_s14  }
 0x473 PF: > { %s996_s19 = sand.u32 1, %s1598_s24   ;;  %p1238_p3 = pnand %p1162_p11, %p1721_p6 }
 0x474   : > { %s997_s30 = scalar_lea.sflag [#allocation8], %s996_s19 }
 0x475   : > { %p1239_p7 = pneg %p1238_p3 }
 0x477   : > { %1593 = dma.done.wait (%p1239_p7), %s997_s30, 128  }
 0x478   : > { %1595 = vsyncadd (%p1239_p7), %s997_s30, 4294967168  ;;  %s30_s29 = sadd.s32 1, %s1618_s29   ;;  %s2007_s23 = sld [smem:[#allocation24_spill]] }
 0x479   : > { %p27_p9 = scmp.ge.s32.totalorder %s30_s29, 4   ;;  %s2008_s26 = sld [smem:[#allocation28_spill]] }
 0x47a   : > { %s2009_s27 = sld [smem:[#allocation25_spill]]  ;;  %s2011_s24 = smov %s1602_s25 }
 0x47b   : > { %s2010_s28 = sld [smem:[#allocation27_spill]]  ;;  %29 = sbr.rel (!%p27_p9) target bundleno = 16 (0x10), region = 146 }
 0x47e   : > { %s2012_s25 = smov %s2007_s23 }
 0x480   :  { %1003 = vsyncpa [#allocation7], 1 }
 0x481   :  { %1005 = vsyncpa [#allocation7 + $0x1], 1 }
 0x482   :  { %1006 = vsyncpa [#allocation10], 1 }
 0x483   :  { %1008 = vsyncpa [#allocation10 + $0x1], 1 }
 0x484   :  { %1009 = vsyncpa [#allocation13], 1 }
 0x485   :  { %1011 = vsyncpa [#allocation13 + $0x1], 1 }
 0x486   :  { %1012 = vsyncpa [#allocation16], 1 }
 0x487   :  { %1013 = vsyncpa [#allocation8], 1 }
 0x488   :  { %1015 = vsyncpa [#allocation8 + $0x1], 1 }

</bundles_post_ra>
